<compile_context>
chip_gen: v5e
topology: v5e:2x2
jax: 0.10.0
libtpu: 0.0.40
codegen_flags: <defaults>
</compile_context>

<pallas_src>
import functools

import jax
import jax.numpy as jnp
from jax.experimental import pallas as pl
from jax.experimental.pallas import tpu as pltpu


def _mlp_fused_kernel(*refs, n_layers: int):
    """Fused MLP body. refs = (x, w0, b0, w1, b1, ..., w_{L-1}, b_{L-1}, out)."""
    x_ref = refs[0]
    o_ref = refs[-1]

    h = x_ref[...].astype(jnp.float32)
    for i in range(n_layers):
        w = refs[1 + 2 * i][...]  # (in_i, out_i)
        b = refs[2 + 2 * i][...]  # (1, out_i)
        h = jnp.dot(h, w, preferred_element_type=jnp.float32) + b
        if i != n_layers - 1:     # hidden layers get ReLU, final layer does not
            h = jnp.maximum(h, 0.0)
    o_ref[...] = h.astype(o_ref.dtype)


def _const_spec(shape):
    """Full-array block, same block for every grid step (weights/biases)."""
    return pl.BlockSpec(shape, lambda i: (0,) * len(shape))


def simple_mlp_forward(params, x, context=0, batch_tile=128):
    """Forward pass of SimpleMLP as one fused Pallas kernel.

    params: list of (w, b2d) with w:(in,out) and b2d:(1,out).
    x: (batch, input_size) float32.
    """
    n_layers = len(params)
    batch, in_dim = x.shape
    out_dim = params[-1][0].shape[1]

    # Pick a batch tile: full batch for small inputs (single grid step), else a
    # lane/sublane-friendly tile (multiple of 8) with zero-padding of the batch.
    if batch <= batch_tile:
        tb = batch
        padded_batch = batch
    else:
        tb = batch_tile
        padded_batch = ((batch + tb - 1) // tb) * tb

    if padded_batch != batch:
        x = jnp.pad(x, ((0, padded_batch - batch), (0, 0)))

    grid = (padded_batch // tb,)

    flat_inputs = [x]
    in_specs = [pl.BlockSpec((tb, in_dim), lambda i: (i, 0))]
    for w, b2d in params:
        flat_inputs.extend([w, b2d])
        in_specs.extend([_const_spec(w.shape), _const_spec(b2d.shape)])

    kernel = functools.partial(_mlp_fused_kernel, n_layers=n_layers)
    out = pl.pallas_call(
        kernel,
        out_shape=jax.ShapeDtypeStruct((padded_batch, out_dim), x.dtype),
        grid=grid,
        in_specs=in_specs,
        out_specs=pl.BlockSpec((tb, out_dim), lambda i: (i, 0)),
        compiler_params=pltpu.CompilerParams(
            dimension_semantics=("parallel",)),
    )(*flat_inputs)

    if padded_batch != batch:
        out = out[:batch]
    return out


# One XLA program for the whole forward pass (single pallas_call inside).
simple_mlp_forward_jit = jax.jit(
    simple_mlp_forward, static_argnames=("context", "batch_tile"))


def init_simple_mlp_params(key, input_size, hidden_layers, output_size):
    """Deterministic init mirroring nn.Linear default (U(-1/sqrt(fan_in), ..)).

    Returns a list of (w, b2d): w is (in, out) (pre-transposed from PyTorch's
    (out, in)), b2d is (1, out) so no reshape happens on the hot path.
    """
    sizes = [input_size] + list(hidden_layers) + [output_size]
    params = []
    for i in range(len(sizes) - 1):
        fan_in, fan_out = sizes[i], sizes[i + 1]
        key, kw, kb = jax.random.split(key, 3)
        bound = 1.0 / jnp.sqrt(fan_in)
        w = jax.random.uniform(kw, (fan_in, fan_out), jnp.float32, -bound, bound)
        b = jax.random.uniform(kb, (1, fan_out), jnp.float32, -bound, bound)
        params.append((w, b))
    return params


if __name__ == "__main__":
    # SimpleMLP(input_size=16, hidden_layers=[32, 32], output_size=8)
    input_size = 16
    hidden_layers = [32, 32]
    output_size = 8
    batch = 2

    key = jax.random.PRNGKey(0)
    key, kx = jax.random.split(key)
    x = jax.random.normal(kx, (batch, input_size), jnp.float32)

    params = init_simple_mlp_params(key, input_size, hidden_layers, output_size)

    out = simple_mlp_forward_jit(params, x)
    out = jax.block_until_ready(out)

    # Pure-JAX reference check.
    ref = x
    for i, (w, b) in enumerate(params):
        ref = ref @ w + b
        if i != len(params) - 1:
            ref = jnp.maximum(ref, 0.0)
    assert out.shape == (batch, output_size)
    assert jnp.allclose(out, ref, atol=1e-5, rtol=1e-5)

    print("KERNEL_OK")
</pallas_src>

<mosaic_0001>
module attributes {stable_mosaic.version = 11 : i64} {
  func.func @_mlp_fused_kernel(%arg0: i32, %arg1: memref<2x16xf32, #tpu.memory_space<vmem>>, %arg2: memref<16x32xf32, #tpu.memory_space<vmem>>, %arg3: memref<1x32xf32, #tpu.memory_space<vmem>>, %arg4: memref<32x32xf32, #tpu.memory_space<vmem>>, %arg5: memref<1x32xf32, #tpu.memory_space<vmem>>, %arg6: memref<32x8xf32, #tpu.memory_space<vmem>>, %arg7: memref<1x8xf32, #tpu.memory_space<vmem>>, %arg8: memref<2x8xf32, #tpu.memory_space<vmem>>) attributes {dimension_semantics = [#tpu.dimension_semantics<parallel>], iteration_bounds = array<i64: 1>, scalar_prefetch = 0 : i64, scratch_operands = 0 : i64, tpu.core_type = #tpu.core_type<tc>, window_params = [{transform_indices = @transform_0, window_bounds = array<i64: 2, 16>}, {pipeline_mode = #tpu.pipeline_mode<synchronous>, transform_indices = @transform_1, window_bounds = array<i64: 16, 32>}, {pipeline_mode = #tpu.pipeline_mode<synchronous>, transform_indices = @transform_2, window_bounds = array<i64: 1, 32>}, {pipeline_mode = #tpu.pipeline_mode<synchronous>, transform_indices = @transform_3, window_bounds = array<i64: 32, 32>}, {pipeline_mode = #tpu.pipeline_mode<synchronous>, transform_indices = @transform_4, window_bounds = array<i64: 1, 32>}, {pipeline_mode = #tpu.pipeline_mode<synchronous>, transform_indices = @transform_5, window_bounds = array<i64: 32, 8>}, {pipeline_mode = #tpu.pipeline_mode<synchronous>, transform_indices = @transform_6, window_bounds = array<i64: 1, 8>}, {transform_indices = @transform_7, window_bounds = array<i64: 2, 8>}]} {
    %c0 = arith.constant 0 : index
    %c0_0 = arith.constant 0 : index
    %0 = vector.load %arg1[%c0, %c0_0] : memref<2x16xf32, #tpu.memory_space<vmem>>, vector<2x16xf32>
    %c0_1 = arith.constant 0 : index
    %c0_2 = arith.constant 0 : index
    %1 = vector.load %arg2[%c0_1, %c0_2] : memref<16x32xf32, #tpu.memory_space<vmem>>, vector<16x32xf32>
    %c0_3 = arith.constant 0 : index
    %c0_4 = arith.constant 0 : index
    %2 = vector.load %arg3[%c0_3, %c0_4] : memref<1x32xf32, #tpu.memory_space<vmem>>, vector<1x32xf32>
    %cst = arith.constant dense<0.000000e+00> : vector<2x32xf32>
    %3 = tpu.matmul %0, %1, %cst {dimension_numbers = #tpu.dot_dimension_numbers<[1], [0], [0], [1], [0, 0, 1, 1], [], []>} : vector<2x16xf32>, vector<16x32xf32>, vector<2x32xf32> -> vector<2x32xf32>
    %4 = vector.broadcast %2 : vector<1x32xf32> to vector<2x32xf32>
    %5 = arith.addf %3, %4 : vector<2x32xf32>
    %cst_5 = arith.constant 0.000000e+00 : f32
    %6 = vector.broadcast %cst_5 : f32 to vector<2x32xf32>
    %7 = arith.maximumf %5, %6 : vector<2x32xf32>
    %c0_6 = arith.constant 0 : index
    %c0_7 = arith.constant 0 : index
    %8 = vector.load %arg4[%c0_6, %c0_7] : memref<32x32xf32, #tpu.memory_space<vmem>>, vector<32x32xf32>
    %c0_8 = arith.constant 0 : index
    %c0_9 = arith.constant 0 : index
    %9 = vector.load %arg5[%c0_8, %c0_9] : memref<1x32xf32, #tpu.memory_space<vmem>>, vector<1x32xf32>
    %cst_10 = arith.constant dense<0.000000e+00> : vector<2x32xf32>
    %10 = tpu.matmul %7, %8, %cst_10 {dimension_numbers = #tpu.dot_dimension_numbers<[1], [0], [0], [1], [0, 0, 1, 1], [], []>} : vector<2x32xf32>, vector<32x32xf32>, vector<2x32xf32> -> vector<2x32xf32>
    %11 = vector.broadcast %9 : vector<1x32xf32> to vector<2x32xf32>
    %12 = arith.addf %10, %11 : vector<2x32xf32>
    %cst_11 = arith.constant 0.000000e+00 : f32
    %13 = vector.broadcast %cst_11 : f32 to vector<2x32xf32>
    %14 = arith.maximumf %12, %13 : vector<2x32xf32>
    %c0_12 = arith.constant 0 : index
    %c0_13 = arith.constant 0 : index
    %15 = vector.load %arg6[%c0_12, %c0_13] : memref<32x8xf32, #tpu.memory_space<vmem>>, vector<32x8xf32>
    %c0_14 = arith.constant 0 : index
    %c0_15 = arith.constant 0 : index
    %16 = vector.load %arg7[%c0_14, %c0_15] : memref<1x8xf32, #tpu.memory_space<vmem>>, vector<1x8xf32>
    %cst_16 = arith.constant dense<0.000000e+00> : vector<2x8xf32>
    %17 = tpu.matmul %14, %15, %cst_16 {dimension_numbers = #tpu.dot_dimension_numbers<[1], [0], [0], [1], [0, 0, 1, 1], [], []>} : vector<2x32xf32>, vector<32x8xf32>, vector<2x8xf32> -> vector<2x8xf32>
    %18 = vector.broadcast %16 : vector<1x8xf32> to vector<2x8xf32>
    %19 = arith.addf %17, %18 : vector<2x8xf32>
    %c0_17 = arith.constant 0 : index
    %c0_18 = arith.constant 0 : index
    %20 = vector.load %arg8[%c0_17, %c0_18] : memref<2x8xf32, #tpu.memory_space<vmem>>, vector<2x8xf32>
    tpu.vector_store %arg8[%c0_17, %c0_18], %19 {strides = array<i32>} : memref<2x8xf32, #tpu.memory_space<vmem>>, vector<2x8xf32>,
    return
  }
  func.func @transform_0(%arg0: i32) -> (i32, i32) {
    %c0_i32 = arith.constant 0 : i32
    %c0_i32_0 = arith.constant 0 : i32
    return %arg0, %c0_i32 : i32, i32
  }
  func.func @transform_1(%arg0: i32) -> (i32, i32) {
    %c0_i32 = arith.constant 0 : i32
    %c0_i32_0 = arith.constant 0 : i32
    %c0_i32_1 = arith.constant 0 : i32
    return %c0_i32, %c0_i32_0 : i32, i32
  }
  func.func @transform_2(%arg0: i32) -> (i32, i32) {
    %c0_i32 = arith.constant 0 : i32
    %c0_i32_0 = arith.constant 0 : i32
    %c0_i32_1 = arith.constant 0 : i32
    return %c0_i32, %c0_i32_0 : i32, i32
  }
  func.func @transform_3(%arg0: i32) -> (i32, i32) {
    %c0_i32 = arith.constant 0 : i32
    %c0_i32_0 = arith.constant 0 : i32
    %c0_i32_1 = arith.constant 0 : i32
    return %c0_i32, %c0_i32_0 : i32, i32
  }
  func.func @transform_4(%arg0: i32) -> (i32, i32) {
    %c0_i32 = arith.constant 0 : i32
    %c0_i32_0 = arith.constant 0 : i32
    %c0_i32_1 = arith.constant 0 : i32
    return %c0_i32, %c0_i32_0 : i32, i32
  }
  func.func @transform_5(%arg0: i32) -> (i32, i32) {
    %c0_i32 = arith.constant 0 : i32
    %c0_i32_0 = arith.constant 0 : i32
    %c0_i32_1 = arith.constant 0 : i32
    return %c0_i32, %c0_i32_0 : i32, i32
  }
  func.func @transform_6(%arg0: i32) -> (i32, i32) {
    %c0_i32 = arith.constant 0 : i32
    %c0_i32_0 = arith.constant 0 : i32
    %c0_i32_1 = arith.constant 0 : i32
    return %c0_i32, %c0_i32_0 : i32, i32
  }
  func.func @transform_7(%arg0: i32) -> (i32, i32) {
    %c0_i32 = arith.constant 0 : i32
    %c0_i32_0 = arith.constant 0 : i32
    return %arg0, %c0_i32 : i32, i32
  }
}

</mosaic_0001>

<bundles_post_ra>
// kernel: simple_mlp_forward.1
= control target key start
LH: loop header
LB: loop body
LE: loop exit
PB: predicated region body
PF: predicated region fallthrough
CT: control target
= control target key end

     0   :  { %12 = vsyncpa [#allocation3], 0  ;;  %s306_s0 = inlined_call_operand.vmem [shape: f32[2,16], index: 0, kind: input, shape index: {}]   ;;  %s307_s1 = inlined_call_operand.hbm [shape: f32[16,32], index: 1, kind: input, shape index: {}]   ;;  %s308_s2 = inlined_call_operand.vmem [shape: f32[1,32], index: 2, kind: input, shape index: {}]   ;;  %s309_s3 = inlined_call_operand.vmem [shape: f32[32,32], index: 3, kind: input, shape index: {}]   ;;  %s310_s4 = inlined_call_operand.vmem [shape: f32[1,32], index: 4, kind: input, shape index: {}]   ;;  %s311_s5 = inlined_call_operand.vmem [shape: f32[32,8], index: 5, kind: input, shape index: {}]   ;;  %s312_s6 = inlined_call_operand.vmem [shape: f32[1,8], index: 6, kind: input, shape index: {}]   ;;  %s313_s7 = inlined_call_operand.hbm [shape: f32[2,8], index: 7, kind: output, shape index: {}]  }
   0x1   :  { %13 = vsyncpa [#allocation4], 0  ;;  %s20_s26 = sshll.u32 %s307_s1, 4  ;;  %s220_s27 = smov [#allocation2]   ;;  %s21_s26 = int_to_ptr.hbm [resolvable:$true] %s20_s26 }
   0x2   :  { %s22_s28 = sshll.u32 %s220_s27, 4  ;;  %s221_s29 = smov 128   ;;  %s23_s28 = int_to_ptr.vmem [resolvable:$true] %s22_s28 }
   0x3   :  { %s222_s30 = smov 8  }
   0x4   :  { %28 = dma.hbm_to_vmem [thread:$0]  %s21_s26, 256, %s23_s28, [#allocation3], %s221_s29, %s221_s29, %s222_s30  }
   0x5   :  { %216 = dma.done.wait [#allocation3], 256  }
   0x6   :  { %217 = vsyncadd [#allocation3], 4294967040  ;;  %v45_v0 = vld [vmem:[#allocation2 + $0x8] sm:$0xff]  ;;  %v44_v1 = vld [vmem:[#allocation2] sm:$0xff]  ;;  %vm50_vm0 = vcmask 130048   ;;  %vm83_vm1 = vcmask 261120  }
   0x7   :  { %68 = vmatpush.msra.mxu0 %v45_v0  ;;  %v43_v2 = vld [vmem:[%s306_s0] sm:$0x3]  ;;  %v78_v3 = vld [vmem:[%s309_s3 + $0x18] sm:$0xff]  ;;  %v77_v4 = vld [vmem:[%s309_s3 + $0x10] sm:$0xff]  ;;  %s223_s28 = smov [#allocation5]   ;;  %s148_s9 = sshll.u32 %s313_s7, 4  ;;  %s149_s9 = int_to_ptr.hbm [resolvable:$true] %s148_s9 }
   0x8   :  { %99 = vmatpush.msra.mxu1 %v78_v3  ;;  %v76_v5 = vld [vmem:[%s309_s3 + $0x8] sm:$0xff]  ;;  %v75_v6 = vld [vmem:[%s309_s3] sm:$0xff]  ;;  %v111_v7 = vld [vmem:[%s311_s5 + $0x18] sm:$0xff]  ;;  %s146_s29 = sshll.u32 %s223_s28, 4  ;;  %vm139_vm2 = vcmask 58368   ;;  %s147_s29 = int_to_ptr.vmem [resolvable:$true] %s146_s29 }
   0x9   :  { %69 = vmatpush.msra.mxu0 %v44_v1  ;;  %131 = vmatpush.msra.mxu2 %v111_v7  ;;  %v165_v8 = vld [vmem:[%s308_s2] ss:$0 sm:$0xff]  ;;  %v110_v12 = vld [vmem:[%s311_s5 + $0x10] sm:$0xff]  ;;  %v109_v13 = vld [vmem:[%s311_s5 + $0x8] sm:$0xff] }
   0xa   :  { %158 = vmatmul.msk.f32.vlgmr.msra.gmra.mxu0 %vm50_vm0, %v43_v2  ;;  %100 = vmatpush.msra.mxu1 %v77_v4  ;;  %v108_v14 = vld [vmem:[%s311_s5] sm:$0xff] }
   0xb   :  { %132 = vmatpush.msra.mxu2 %v110_v12  ;;  %v166_v15 = vld [vmem:[%s310_s4] ss:$0 sm:$0xff] }
   0xc   :  { %101 = vmatpush.msra.mxu1 %v76_v5  ;;  %v167_v19 = vld [vmem:[%s312_s6] ss:$0 sm:$0xff] }
   0xd   :  { %133 = vmatpush.msra.mxu2 %v109_v13 }
   0xe   :  { %102 = vmatpush.msra.mxu1 %v75_v6 }
   0xf   :  { %134 = vmatpush.msra.mxu2 %v108_v14 }
  0x87   :  { %v71_v9 = vpop.f32.mrf.mxu0 }
  0x88   :  { %v72_v10 = vadd.f32 %v165_v8, %v71_v9 }
  0x8a   :  { %v74_v11 = vmax.f32 %v72_v10, 0.0 }
  0x8c   :  { %159 = vmatmul.msk.f32.vlgmr.msra.gmra.mxu1 %vm83_vm1, %v74_v11 }
 0x109   :  { %v104_v16 = vpop.f32.mrf.mxu1 }
 0x10a   :  { %v105_v17 = vadd.f32 %v166_v15, %v104_v16 }
 0x10c   :  { %v107_v18 = vmax.f32 %v105_v17, 0.0 }
 0x10e   :  { %160 = vmatmul.msk.f32.vlgmr.msra.gmra.mxu2 %vm83_vm1, %v107_v18 }
 0x191   :  { %v136_v20 = vpop.f32.mrf.mxu2 }
 0x192   :  { %v137_v21 = vadd.f32 %v167_v19, %v136_v20 }
 0x194   :  { %140 = vst.msk [vmem:[#allocation5] sm:$0x3] %vm139_vm2, %v137_v21 }
 0x195   :  { %151 = dma.vmem_to_hbm [thread:$0]  %s147_s29, 32, %s149_s9, [#allocation4]  }
 0x196   :  { %218 = dma.done.wait [#allocation4], 32  }
 0x197   :  { %219 = vsyncadd [#allocation4], 4294967264 }
 0x198   :  { %156 = vsyncpa [#allocation3], 1 }
 0x199   :  { %157 = vsyncpa [#allocation4], 1 }

</bundles_post_ra>
